<compile_context>
chip_gen: v6e
topology: v6e:2x2x1
jax: 0.10.0
libtpu: 0.0.40
codegen_flags: <defaults>
</compile_context>

<pallas_src>
import jax
import jax.numpy as jnp
from jax.experimental import pallas as pl
from jax.experimental.pallas import tpu as pltpu


def _error_gradient_kernel(a_ref, t_ref, wa_ref, wt_ref, b_ref, o_ref):
    # out_tile = a_tile @ Wfa + t_tile @ Wft + b_fused   (all f32 accumulate)
    acc = jnp.dot(a_ref[...], wa_ref[...], preferred_element_type=jnp.float32)
    acc = acc + jnp.dot(t_ref[...], wt_ref[...],
                        preferred_element_type=jnp.float32)
    o_ref[...] = (acc + b_ref[...]).astype(o_ref.dtype)


def _round_up(x, m):
    return -(-x // m) * m


def error_gradient_forward(action_embed, time_embed, params):
    """params: dict of PyTorch-convention (out, in) weights and (out,) biases."""
    B, A = action_embed.shape
    T = time_embed.shape[1]
    H = params["action_w"].shape[0]          # hidden_dim

    # --- Algebraic fusion of the affine chain (trace-time, tiny GEMMs) ------
    wa_t = params["action_w"].T              # (A, H)
    wt_t = params["time_w"].T                # (T, H)
    wm_t = params["model_w"].T               # (2H, T+A)
    wf_t = params["final_w"].T               # (T+A, A)
    wm_a, wm_tt = wm_t[:H], wm_t[H:]         # (H, T+A) each

    fused_a = wa_t @ wm_a @ wf_t             # (A, A)
    fused_t = wt_t @ wm_tt @ wf_t            # (T, A)
    fused_b = ((params["action_b"] @ wm_a
                + params["time_b"] @ wm_tt
                + params["model_b"]) @ wf_t
               + params["final_b"])[None, :]  # (1, A)

    # --- Lane-dense output: pad output columns to a multiple of 128 ---------
    OUT = _round_up(A, 128)
    fused_a = jnp.pad(fused_a, ((0, 0), (0, OUT - A)))
    fused_t = jnp.pad(fused_t, ((0, 0), (0, OUT - A)))
    fused_b = jnp.pad(fused_b, ((0, 0), (0, OUT - A)))

    # --- Batch tiling --------------------------------------------------------
    if B >= 512:
        TB = 512                              # fits VMEM everywhere (incl. v7x)
    else:
        TB = _round_up(B, 8)                  # sublane-aligned small batch
    B_pad = _round_up(B, TB)
    a_p = jnp.pad(action_embed, ((0, B_pad - B), (0, 0)))
    t_p = jnp.pad(time_embed, ((0, B_pad - B), (0, 0)))

    grid = (B_pad // TB,)
    out = pl.pallas_call(
        _error_gradient_kernel,
        out_shape=jax.ShapeDtypeStruct((B_pad, OUT), action_embed.dtype),
        grid=grid,
        in_specs=[
            pl.BlockSpec((TB, A), lambda i: (i, 0)),     # action tile
            pl.BlockSpec((TB, T), lambda i: (i, 0)),     # time tile
            pl.BlockSpec((A, OUT), lambda i: (0, 0)),    # fused W_a (resident)
            pl.BlockSpec((T, OUT), lambda i: (0, 0)),    # fused W_t (resident)
            pl.BlockSpec((1, OUT), lambda i: (0, 0)),    # fused bias (resident)
        ],
        out_specs=pl.BlockSpec((TB, OUT), lambda i: (i, 0)),
        compiler_params=pltpu.CompilerParams(
            dimension_semantics=("parallel",)),
    )(a_p, t_p, fused_a, fused_t, fused_b)

    return out[:B, :A]
    # TODO(synk): optional bf16 MXU operands (f32 accumulate) for v6e/v7x if
    # this op ever becomes compute-bound at large B.


def _reference_forward(action_embed, time_embed, params):
    a_p = action_embed @ params["action_w"].T + params["action_b"]
    t_p = time_embed @ params["time_w"].T + params["time_b"]
    cat = jnp.concatenate([a_p, t_p], axis=-1)
    mid = cat @ params["model_w"].T + params["model_b"]
    return mid @ params["final_w"].T + params["final_b"]


def _init_linear(key, out_dim, in_dim):
    # Deterministic init mimicking torch.nn.Linear default (uniform +/- 1/sqrt(in)).
    kw, kb = jax.random.split(key)
    bound = 1.0 / jnp.sqrt(in_dim)
    w = jax.random.uniform(kw, (out_dim, in_dim), jnp.float32, -bound, bound)
    b = jax.random.uniform(kb, (out_dim,), jnp.float32, -bound, bound)
    return w, b


if __name__ == "__main__":
    batch = 8
    action_embed_dim = 16
    time_embed_dim = 8
    hidden_dim = 32

    key = jax.random.PRNGKey(0)
    k_a, k_t, k_m, k_f, k_x1, k_x2 = jax.random.split(key, 6)

    action_w, action_b = _init_linear(k_a, hidden_dim, action_embed_dim)
    time_w, time_b = _init_linear(k_t, hidden_dim, time_embed_dim)
    model_w, model_b = _init_linear(
        k_m, time_embed_dim + action_embed_dim, hidden_dim * 2)
    final_w, final_b = _init_linear(
        k_f, action_embed_dim, time_embed_dim + action_embed_dim)

    params = dict(action_w=action_w, action_b=action_b,
                  time_w=time_w, time_b=time_b,
                  model_w=model_w, model_b=model_b,
                  final_w=final_w, final_b=final_b)

    action_embed = jax.random.normal(k_x1, (batch, action_embed_dim), jnp.float32)
    time_embed = jax.random.normal(k_x2, (batch, time_embed_dim), jnp.float32)

    out = error_gradient_forward(action_embed, time_embed, params)
    out = jax.block_until_ready(out)

    ref = _reference_forward(action_embed, time_embed, params)
    assert out.shape == (batch, action_embed_dim)
    # Fused weights reassociate the matmul chain -> slightly looser tolerance.
    assert jnp.allclose(out, ref, atol=1e-4, rtol=1e-4)
    print("KERNEL_OK")
</pallas_src>

<mosaic_0001>
module attributes {stable_mosaic.version = 11 : i64} {
  func.func @_error_gradient_kernel(%arg0: i32, %arg1: memref<8x16xf32, #tpu.memory_space<vmem>>, %arg2: memref<8x8xf32, #tpu.memory_space<vmem>>, %arg3: memref<16x128xf32, #tpu.memory_space<vmem>>, %arg4: memref<8x128xf32, #tpu.memory_space<vmem>>, %arg5: memref<1x128xf32, #tpu.memory_space<vmem>>, %arg6: memref<8x128xf32, #tpu.memory_space<vmem>>) attributes {dimension_semantics = [#tpu.dimension_semantics<parallel>], iteration_bounds = array<i64: 1>, scalar_prefetch = 0 : i64, scratch_operands = 0 : i64, tpu.core_type = #tpu.core_type<tc>, window_params = [{transform_indices = @transform_0, window_bounds = array<i64: 8, 16>}, {transform_indices = @transform_1, window_bounds = array<i64: 8, 8>}, {pipeline_mode = #tpu.pipeline_mode<synchronous>, transform_indices = @transform_2, window_bounds = array<i64: 16, 128>}, {pipeline_mode = #tpu.pipeline_mode<synchronous>, transform_indices = @transform_3, window_bounds = array<i64: 8, 128>}, {pipeline_mode = #tpu.pipeline_mode<synchronous>, transform_indices = @transform_4, window_bounds = array<i64: 1, 128>}, {transform_indices = @transform_5, window_bounds = array<i64: 8, 128>}]} {
    %c0 = arith.constant 0 : index
    %c0_0 = arith.constant 0 : index
    %0 = vector.load %arg1[%c0, %c0_0] : memref<8x16xf32, #tpu.memory_space<vmem>>, vector<8x16xf32>
    %c0_1 = arith.constant 0 : index
    %c0_2 = arith.constant 0 : index
    %1 = vector.load %arg3[%c0_1, %c0_2] : memref<16x128xf32, #tpu.memory_space<vmem>>, vector<16x128xf32>
    %cst = arith.constant dense<0.000000e+00> : vector<8x128xf32>
    %2 = tpu.matmul %0, %1, %cst {dimension_numbers = #tpu.dot_dimension_numbers<[1], [0], [0], [1], [0, 0, 1, 1], [], []>} : vector<8x16xf32>, vector<16x128xf32>, vector<8x128xf32> -> vector<8x128xf32>
    %c0_3 = arith.constant 0 : index
    %c0_4 = arith.constant 0 : index
    %3 = vector.load %arg2[%c0_3, %c0_4] : memref<8x8xf32, #tpu.memory_space<vmem>>, vector<8x8xf32>
    %c0_5 = arith.constant 0 : index
    %c0_6 = arith.constant 0 : index
    %4 = vector.load %arg4[%c0_5, %c0_6] : memref<8x128xf32, #tpu.memory_space<vmem>>, vector<8x128xf32>
    %cst_7 = arith.constant dense<0.000000e+00> : vector<8x128xf32>
    %5 = tpu.matmul %3, %4, %cst_7 {dimension_numbers = #tpu.dot_dimension_numbers<[1], [0], [0], [1], [0, 0, 1, 1], [], []>} : vector<8x8xf32>, vector<8x128xf32>, vector<8x128xf32> -> vector<8x128xf32>
    %6 = arith.addf %2, %5 : vector<8x128xf32>
    %c0_8 = arith.constant 0 : index
    %c0_9 = arith.constant 0 : index
    %7 = vector.load %arg5[%c0_8, %c0_9] : memref<1x128xf32, #tpu.memory_space<vmem>>, vector<1x128xf32>
    %8 = vector.broadcast %7 : vector<1x128xf32> to vector<8x128xf32>
    %9 = arith.addf %6, %8 : vector<8x128xf32>
    %c0_10 = arith.constant 0 : index
    %c0_11 = arith.constant 0 : index
    %10 = vector.load %arg6[%c0_10, %c0_11] : memref<8x128xf32, #tpu.memory_space<vmem>>, vector<8x128xf32>
    tpu.vector_store %arg6[%c0_10, %c0_11], %9 {strides = array<i32>} : memref<8x128xf32, #tpu.memory_space<vmem>>, vector<8x128xf32>,
    return
  }
  func.func @transform_0(%arg0: i32) -> (i32, i32) {
    %c0_i32 = arith.constant 0 : i32
    %c0_i32_0 = arith.constant 0 : i32
    return %arg0, %c0_i32 : i32, i32
  }
  func.func @transform_1(%arg0: i32) -> (i32, i32) {
    %c0_i32 = arith.constant 0 : i32
    %c0_i32_0 = arith.constant 0 : i32
    return %arg0, %c0_i32 : i32, i32
  }
  func.func @transform_2(%arg0: i32) -> (i32, i32) {
    %c0_i32 = arith.constant 0 : i32
    %c0_i32_0 = arith.constant 0 : i32
    %c0_i32_1 = arith.constant 0 : i32
    return %c0_i32, %c0_i32_0 : i32, i32
  }
  func.func @transform_3(%arg0: i32) -> (i32, i32) {
    %c0_i32 = arith.constant 0 : i32
    %c0_i32_0 = arith.constant 0 : i32
    %c0_i32_1 = arith.constant 0 : i32
    return %c0_i32, %c0_i32_0 : i32, i32
  }
  func.func @transform_4(%arg0: i32) -> (i32, i32) {
    %c0_i32 = arith.constant 0 : i32
    %c0_i32_0 = arith.constant 0 : i32
    %c0_i32_1 = arith.constant 0 : i32
    return %c0_i32, %c0_i32_0 : i32, i32
  }
  func.func @transform_5(%arg0: i32) -> (i32, i32) {
    %c0_i32 = arith.constant 0 : i32
    %c0_i32_0 = arith.constant 0 : i32
    return %arg0, %c0_i32 : i32, i32
  }
}

</mosaic_0001>

<bundles_post_ra>
// kernel: tpu_custom_call.1
= control target key start
LH: loop header
LB: loop body
LE: loop exit
PB: predicated region body
PF: predicated region fallthrough
CT: control target
= control target key end

     0   :  { %10 = vsyncpa [#allocation3], 0  ;;  %s443_s0 = inlined_call_operand.hbm [shape: f32[8,16], index: 0, kind: input, shape index: {}]   ;;  %s444_s1 = inlined_call_operand.hbm [shape: f32[8,8], index: 1, kind: input, shape index: {}]   ;;  %s445_s2 = inlined_call_operand.hbm [shape: f32[16,128], index: 2, kind: input, shape index: {}]   ;;  %s446_s3 = inlined_call_operand.hbm [shape: f32[8,128], index: 3, kind: input, shape index: {}]   ;;  %s447_s4 = inlined_call_operand.vmem [shape: f32[1,128], index: 4, kind: input, shape index: {}]   ;;  %s448_s5 = inlined_call_operand.hbm [shape: f32[8,128], index: 5, kind: output, shape index: {}]  }
   0x1   :  { %11 = vsyncpa [#allocation6], 0 }
   0x2   :  { %12 = vsyncpa [#allocation9], 0 }
   0x3   :  { %13 = vsyncpa [#allocation4], 0  ;;  %s386_s18 = smov [#allocation5]   ;;  %s387_s20 = smov [#allocation2]  }
   0x4   :  { %s30_s19 = sshll.u32 %s386_s18, 4  ;;  %s20_s21 = sshll.u32 %s387_s20, 4  ;;  %s31_s19 = int_to_ptr.vmem [resolvable:$true] %s30_s19  ;;  %s21_s21 = int_to_ptr.vmem [resolvable:$true] %s20_s21 }
   0x5   :  { %s286_s22 = scalar_lea.vmem %s31_s19, 128  ;;  %p291_p1 = scmp.lt.s32.totalorder %s31_s19, %s31_s19 }
   0x6   :  { %p287_p0 = scmp.ne.s32.totalorder %s31_s19, %s286_s22  ;;  %p292_p2 = scmp.lt.s32.totalorder %s286_s22, %s286_s22 }
   0x8   :  { %p293_p3 = por %p292_p2, %p291_p1 }
   0xa   :  { %p294_p4 = pnand %p293_p3, %p287_p0 }
   0xc   :  { %297 = shalt.err (!%p294_p4)
}
   0xd   :  { %33 = dma.hbm_to_vmem [thread:$0]  %s444_s1, 128, %s31_s19, [#allocation6]  }
   0xe   :  { %s306_s25 = scalar_lea.vmem %s21_s21, 128  ;;  %p311_p6 = scmp.lt.s32.totalorder %s21_s21, %s21_s21 }
   0xf   :  { %p307_p5 = scmp.ne.s32.totalorder %s21_s21, %s306_s25  ;;  %p312_p7 = scmp.lt.s32.totalorder %s306_s25, %s306_s25 }
  0x11   :  { %p313_p8 = por %p312_p7, %p311_p6 }
  0x13   :  { %p314_p9 = pnand %p313_p8, %p307_p5 }
  0x15   :  { %317 = shalt.err (!%p314_p9)
}
  0x16   :  { %23 = dma.hbm_to_vmem [thread:$0]  %s443_s0, 128, %s21_s21, [#allocation3]  }
  0x17   :  { %s388_s28 = smov [#allocation7]  }
  0x18   :  { %s39_s29 = sshll.u32 %s388_s28, 4  ;;  %s40_s29 = int_to_ptr.vmem [resolvable:$true] %s39_s29 }
  0x19   :  { %s326_s30 = scalar_lea.vmem %s40_s29, 256  ;;  %p331_p11 = scmp.lt.s32.totalorder %s40_s29, %s40_s29 }
  0x1a   :  { %p327_p10 = scmp.ne.s32.totalorder %s40_s29, %s326_s30  ;;  %p332_p12 = scmp.lt.s32.totalorder %s326_s30, %s326_s30 }
  0x1c   :  { %p333_p13 = por %p332_p12, %p331_p11 }
  0x1e   :  { %p334_p0 = pnand %p333_p13, %p327_p10 }
  0x20   :  { %337 = shalt.err (!%p334_p0)
}
  0x21   :  { %s389_s1 = smov 128   ;;  %s390_s6 = smov 8  }
  0x22   :  { %45 = dma.hbm_to_vmem [thread:$0]  %s445_s2, 256, %s40_s29, [#allocation6], %s389_s1, %s389_s1, %s390_s6  }
  0x23   :  { %s391_s9 = smov [#allocation8]  }
  0x24   :  { %s52_s10 = sshll.u32 %s391_s9, 4  ;;  %s53_s10 = int_to_ptr.vmem [resolvable:$true] %s52_s10 }
  0x25   :  { %s346_s0 = scalar_lea.vmem %s53_s10, 128  ;;  %p351_p2 = scmp.lt.s32.totalorder %s53_s10, %s53_s10 }
  0x26   :  { %p347_p1 = scmp.ne.s32.totalorder %s53_s10, %s346_s0  ;;  %p352_p3 = scmp.lt.s32.totalorder %s346_s0, %s346_s0 }
  0x28   :  { %p353_p4 = por %p352_p3, %p351_p2 }
  0x2a   :  { %p354_p5 = pnand %p353_p4, %p347_p1 }
  0x2c   :  { %357 = shalt.err (!%p354_p5)
}
  0x2d   :  { %55 = dma.hbm_to_vmem [thread:$0]  %s446_s3, 128, %s53_s10, [#allocation9]  }
  0x2e   :  { %378 = dma.done.wait [#allocation3], 128  }
  0x2f   :  { %379 = vsyncadd [#allocation3], 4294967168 }
  0x30   :  { %380 = dma.done.wait [#allocation6], 384  }
  0x31   :  { %381 = vsyncadd [#allocation6], 4294966912 }
  0x32   :  { %382 = dma.done.wait [#allocation9], 128  }
  0x33   :  { %383 = vsyncadd [#allocation9], 4294967168  ;;  %v392_v0 = vmov 0.0   ;;  %vm393_vm0 = vmmov 0   ;;  %vm75_vm1 = vcmask 64512   ;;  %v74_v1 = vld [vmem:[#allocation8] sm:$0xff] }
  0x34   :  { %257 = vmatprep.subr.mxu0 %v392_v0  ;;  %262 = vmatprep.subr.mxu1 %v392_v0  ;;  %v72_v2 = vld [vmem:[#allocation7 + $0x8] sm:$0xff]  ;;  %v73_v3 = vld [vmem:[#allocation5] sm:$0xff]  ;;  %v71_v4 = vld [vmem:[#allocation7] sm:$0xff]  ;;  %vm149_vm2 = vcmask 130048   ;;  %s394_s13 = smov [#allocation10]  }
  0x35   :  { %259 = vmatprep.mubr.msk.f32.mxu0 %vm393_vm0, %v392_v0  ;;  %266 = vmatprep.mubr.msk.f32.mxu1 %vm393_vm0, %v392_v0  ;;  %v70_v5 = vld [vmem:[#allocation2] sm:$0xff]  ;;  %s238_s14 = sshll.u32 %s394_s13, 4  ;;  %s239_s14 = int_to_ptr.vmem [resolvable:$true] %s238_s14 }
  0x36   :  { %258 = vmatpush3.msra.mxu0 %v74_v1  ;;  %263 = vmatpush3.msra.mxu1 %v72_v2  ;;  %v251_v9 = vld [vmem:[%s447_s4] ss:$0 sm:$0xff]  ;;  %s358_s15 = scalar_lea.vmem %s239_s14, 128  ;;  %p363_p7 = scmp.lt.s32.totalorder %s239_s14, %s239_s14 }
  0x37   :  { %260 = vmatmul.mubr.msk.f32.vlgmr.msra.gmra.mxu0 %vm75_vm1, %v73_v3  ;;  %264 = vmatprep.subr.mxu1 %v392_v0  ;;  %p359_p6 = scmp.ne.s32.totalorder %s239_s14, %s358_s15  ;;  %p364_p8 = scmp.lt.s32.totalorder %s358_s15, %s358_s15 }
  0x38   :  { %265 = vmatpush3.msra.mxu1 %v71_v4 }
  0x39   :  { %267 = vmatmul.mubr.msk.f32.vlgmr.msra.gmra.mxu1 %vm149_vm2, %v70_v5  ;;  %p365_p9 = por %p364_p8, %p363_p7 }
  0x3b   :  { %p366_p10 = pnand %p365_p9, %p359_p6 }
  0xf7   :  { %v145_v6 = vpop.f32.mrf.mxu0 }
  0xf9   :  { %v261_v7 = vpop.f32.mrf.mxu0  ;;  %v219_v8 = vpop.f32.mrf.mxu1 }
  0xfa   :  { %v220_v10 = vadd.f32 %v219_v8, %v145_v6 }
  0xfb   :  { %v268_v11 = vpop.f32.mrf.mxu1 }
  0xfc   :  { %v230_v12 = vadd.f32 %v251_v9, %v220_v10 }
  0xfe   :  { %231 = vst [vmem:[#allocation10] sm:$0xff] %v230_v12 }
  0xff   :  { %369 = shalt.err (!%p366_p10)
}
 0x100   :  { %241 = dma.vmem_to_hbm [thread:$0]  %s239_s14, 128, %s448_s5, [#allocation4]  }
 0x101   :  { %384 = dma.done.wait [#allocation4], 128  }
 0x102   :  { %385 = vsyncadd [#allocation4], 4294967168 }
 0x103   :  { %245 = vsyncpa [#allocation3], 1 }
 0x104   :  { %246 = vsyncpa [#allocation6], 1 }
 0x105   :  { %247 = vsyncpa [#allocation9], 1 }
 0x106   :  { %248 = vsyncpa [#allocation4], 1 }

</bundles_post_ra>
